<compile_context>
chip_gen: v7x
topology: tpu7x:2x2x1
jax: 0.10.0
libtpu: 0.0.40
codegen_flags: <defaults>
</compile_context>

<pallas_src>
import functools

import jax
import jax.numpy as jnp
from jax.experimental import pallas as pl
from jax.experimental.pallas import tpu as pltpu


# ----------------------------------------------------------------------------
# Per-generation VMEM / tiling plan.
# ----------------------------------------------------------------------------
def _tpu_vmem_capacity_bytes():
    try:
        info = pltpu.get_tpu_info()
        cap = getattr(info, "vmem_capacity_bytes", None)
        if cap:
            return int(cap)
    except Exception:
        pass
    return 64 * 1024 * 1024  # conservative default (v7x per-TensorCore)


def _vmem_plan(per_lane_block_bytes):
    """Returns (vmem_limit_bytes, spatial_lane_cap) derived from the chip's VMEM."""
    vmem_cap = _tpu_vmem_capacity_bytes()
    vmem_limit = max(32 * 1024 * 1024, min(int(0.75 * vmem_cap), 96 * 1024 * 1024))
    # Double-buffered pipelined blocks should use at most ~half the scoped limit.
    cap = (vmem_limit // 2) // max(per_lane_block_bytes, 1)
    cap = max(512, (cap // 128) * 128)     # keep tiles >= 512 lanes (HBM roofline)
    return vmem_limit, min(cap, 8192)


def _spatial_tiling(hw, cap):
    """Returns (padded_hw, tile).  tile == padded_hw when a single full tile fits."""
    if hw <= cap:
        return hw, hw                      # full-extent block, no padding needed
    hw_p = -(-hw // 128) * 128             # lane-dense: pad once to a 128 multiple
    t = (cap // 128) * 128
    while hw_p % t != 0:                   # terminates: 128 always divides hw_p
        t -= 128
    return hw_p, t


# ----------------------------------------------------------------------------
# Fully fused encoder kernel:
# layer3 -> (local_ft store, local_embedder) -> layer4 -> avgpool -> global_embedder
# ----------------------------------------------------------------------------
def _fused_encode_kernel(x_ref, w3_ref, b3_ref, w4_ref, b4_ref,
                         wl_ref, wg_ref, bg_ref,
                         local_ref, gft_ref, lemb_ref, gemb_ref,
                         gacc, *, inv_hw, hw, tm, padded):
    t = pl.program_id(1)

    # layer3 stand-in (1x1 conv + ReLU), NCHW-native: W[Ci,Cin] @ X[Cin,tm].
    x = x_ref[0].astype(jnp.float32)
    h1 = jnp.dot(w3_ref[...], x, preferred_element_type=jnp.float32)
    h1 = jnp.maximum(h1 + b3_ref[...], 0.0)
    local_ref[0] = h1.astype(local_ref.dtype)            # local features (bf16 slab)

    # Fused local_embedder (1x1 Conv2d, bias=False) while h1 is still in vregs.
    lemb_ref[0] = jnp.dot(wl_ref[...], h1,
                          preferred_element_type=jnp.float32).astype(lemb_ref.dtype)

    # layer4 stand-in; intermediate activation never touches HBM.
    h2 = jnp.dot(w4_ref[...], h1, preferred_element_type=jnp.float32)
    h2 = jnp.maximum(h2 + b4_ref[...], 0.0)
    if padded:  # mask padded spatial lanes out of the pooled sum (static branch)
        lane = jax.lax.broadcasted_iota(jnp.int32, h2.shape, 1)
        h2 = jnp.where(t * tm + lane < hw, h2, 0.0)

    # AdaptiveAvgPool2d((1,1)) accumulated in an f32 VMEM scratch.
    @pl.when(t == 0)
    def _():
        gacc[...] = jnp.zeros_like(gacc)

    gacc[...] += jnp.sum(h2, axis=1, keepdims=True)

    # Finalize once: pooled mean + fused global_embedder Linear at the last tile.
    @pl.when(t == pl.num_programs(1) - 1)
    def _():
        gft = gacc[...] * inv_hw                                       # [Cf, 1]
        gft_ref[0] = gft.astype(gft_ref.dtype)
        gemb = jnp.dot(wg_ref[...], gft,
                       preferred_element_type=jnp.float32) + bg_ref[...]
        gemb_ref[0] = gemb.astype(gemb_ref.dtype)


def fused_encode(x_nchw, w3, b3, w4, b4, w_local, w_global_oi, b_global,
                 *, act_dtype=jnp.bfloat16):
    """Returns (global_ft [B,Cf], local_ft [B,Ci,H,W], global_emb [B,E], local_emb [B,E,H,W])."""
    B, Cin, H, W = x_nchw.shape
    HW = H * W
    Ci, Cf, E = w3.shape[0], w4.shape[0], w_local.shape[0]
    xb = jnp.dtype(x_nchw.dtype).itemsize
    ab = jnp.dtype(act_dtype).itemsize
    vmem_limit, cap = _vmem_plan(2 * (Cin * xb + Ci * ab + E * ab))
    hw_p, tm = _spatial_tiling(HW, cap)
    nt = hw_p // tm

    x_flat = x_nchw.reshape(B, Cin, HW)                   # free view; no astype
    if hw_p != HW:
        x_flat = jnp.pad(x_flat, ((0, 0), (0, 0), (0, hw_p - HW)))

    local_f, gft, lemb_f, gemb = pl.pallas_call(
        functools.partial(_fused_encode_kernel, inv_hw=1.0 / float(HW),
                          hw=HW, tm=tm, padded=(hw_p != HW)),
        out_shape=(jax.ShapeDtypeStruct((B, Ci, hw_p), act_dtype),
                   jax.ShapeDtypeStruct((B, Cf, 1), jnp.float32),
                   jax.ShapeDtypeStruct((B, E, hw_p), act_dtype),
                   jax.ShapeDtypeStruct((B, E, 1), jnp.float32)),
        grid_spec=pltpu.PrefetchScalarGridSpec(
            num_scalar_prefetch=0,
            grid=(B, nt),
            in_specs=[
                pl.BlockSpec((1, Cin, tm), lambda b, t: (b, 0, t)),
                pl.BlockSpec((Ci, Cin), lambda b, t: (0, 0)),
                pl.BlockSpec((Ci, 1), lambda b, t: (0, 0)),
                pl.BlockSpec((Cf, Ci), lambda b, t: (0, 0)),
                pl.BlockSpec((Cf, 1), lambda b, t: (0, 0)),
                pl.BlockSpec((E, Ci), lambda b, t: (0, 0)),
                pl.BlockSpec((E, Cf), lambda b, t: (0, 0)),
                pl.BlockSpec((E, 1), lambda b, t: (0, 0)),
            ],
            out_specs=[
                pl.BlockSpec((1, Ci, tm), lambda b, t: (b, 0, t)),
                pl.BlockSpec((1, Cf, 1), lambda b, t: (b, 0, 0)),
                pl.BlockSpec((1, E, tm), lambda b, t: (b, 0, t)),
                pl.BlockSpec((1, E, 1), lambda b, t: (b, 0, 0)),
            ],
            scratch_shapes=[pltpu.VMEM((Cf, 1), jnp.float32)],
        ),
        compiler_params=pltpu.CompilerParams(
            dimension_semantics=("parallel", "arbitrary"),
            vmem_limit_bytes=vmem_limit),
    )(x_flat, w3, b3, w4, b4, w_local, w_global_oi, b_global.reshape(E, 1))

    if hw_p != HW:
        local_f = local_f[:, :, :HW]
        lemb_f = lemb_f[:, :, :HW]
    return (gft.reshape(B, Cf), local_f.reshape(B, Ci, H, W),
            gemb.reshape(B, E), lemb_f.reshape(B, E, H, W))


# ----------------------------------------------------------------------------
# Features-only fused kernel (module's forward / resnet_forward):
# layer3 -> layer4 -> AdaptiveAvgPool2d((1,1))
# ----------------------------------------------------------------------------
def _features_kernel(x_ref, w3_ref, b3_ref, w4_ref, b4_ref,
                     local_ref, gft_ref, gacc, *, inv_hw, hw, tm, padded):
    t = pl.program_id(1)
    x = x_ref[0].astype(jnp.float32)
    h1 = jnp.dot(w3_ref[...], x, preferred_element_type=jnp.float32)
    h1 = jnp.maximum(h1 + b3_ref[...], 0.0)
    local_ref[0] = h1.astype(local_ref.dtype)

    h2 = jnp.dot(w4_ref[...], h1, preferred_element_type=jnp.float32)
    h2 = jnp.maximum(h2 + b4_ref[...], 0.0)
    if padded:
        lane = jax.lax.broadcasted_iota(jnp.int32, h2.shape, 1)
        h2 = jnp.where(t * tm + lane < hw, h2, 0.0)

    @pl.when(t == 0)
    def _():
        gacc[...] = jnp.zeros_like(gacc)

    gacc[...] += jnp.sum(h2, axis=1, keepdims=True)

    @pl.when(t == pl.num_programs(1) - 1)
    def _():
        gft_ref[0] = (gacc[...] * inv_hw).astype(gft_ref.dtype)


def backbone_features(x_nchw, w3, b3, w4, b4, *, act_dtype=jnp.bfloat16):
    B, Cin, H, W = x_nchw.shape
    HW = H * W
    Ci, Cf = w3.shape[0], w4.shape[0]
    xb = jnp.dtype(x_nchw.dtype).itemsize
    ab = jnp.dtype(act_dtype).itemsize
    vmem_limit, cap = _vmem_plan(2 * (Cin * xb + Ci * ab))
    hw_p, tm = _spatial_tiling(HW, cap)
    nt = hw_p // tm

    x_flat = x_nchw.reshape(B, Cin, HW)
    if hw_p != HW:
        x_flat = jnp.pad(x_flat, ((0, 0), (0, 0), (0, hw_p - HW)))

    local_f, gft = pl.pallas_call(
        functools.partial(_features_kernel, inv_hw=1.0 / float(HW),
                          hw=HW, tm=tm, padded=(hw_p != HW)),
        out_shape=(jax.ShapeDtypeStruct((B, Ci, hw_p), act_dtype),
                   jax.ShapeDtypeStruct((B, Cf, 1), jnp.float32)),
        grid_spec=pltpu.PrefetchScalarGridSpec(
            num_scalar_prefetch=0,
            grid=(B, nt),
            in_specs=[
                pl.BlockSpec((1, Cin, tm), lambda b, t: (b, 0, t)),
                pl.BlockSpec((Ci, Cin), lambda b, t: (0, 0)),
                pl.BlockSpec((Ci, 1), lambda b, t: (0, 0)),
                pl.BlockSpec((Cf, Ci), lambda b, t: (0, 0)),
                pl.BlockSpec((Cf, 1), lambda b, t: (0, 0)),
            ],
            out_specs=[
                pl.BlockSpec((1, Ci, tm), lambda b, t: (b, 0, t)),
                pl.BlockSpec((1, Cf, 1), lambda b, t: (b, 0, 0)),
            ],
            scratch_shapes=[pltpu.VMEM((Cf, 1), jnp.float32)],
        ),
        compiler_params=pltpu.CompilerParams(
            dimension_semantics=("parallel", "arbitrary"),
            vmem_limit_bytes=vmem_limit),
    )(x_flat, w3, b3, w4, b4)

    if hw_p != HW:
        local_f = local_f[:, :, :HW]
    return gft.reshape(B, Cf), local_f.reshape(B, Ci, H, W)


# ----------------------------------------------------------------------------
# Standalone local_embedder: 1x1 Conv2d (bias=False), NCHW-native.
# (Kept for the generate_embeddings API on externally provided features.)
# ----------------------------------------------------------------------------
def _conv1x1_nchw_kernel(x_ref, w_ref, o_ref):
    x = x_ref[0].astype(jnp.float32)
    o_ref[0] = jnp.dot(w_ref[...], x,
                       preferred_element_type=jnp.float32).astype(o_ref.dtype)


def conv1x1_nchw(x_nchw, w):
    B, Ci, H, W = x_nchw.shape
    HW = H * W
    E = w.shape[0]
    xb = jnp.dtype(x_nchw.dtype).itemsize
    vmem_limit, cap = _vmem_plan(2 * (Ci * xb + E * xb))
    hw_p, tm = _spatial_tiling(HW, cap)
    nt = hw_p // tm

    x_flat = x_nchw.reshape(B, Ci, HW)
    if hw_p != HW:
        x_flat = jnp.pad(x_flat, ((0, 0), (0, 0), (0, hw_p - HW)))

    out = pl.pallas_call(
        _conv1x1_nchw_kernel,
        out_shape=jax.ShapeDtypeStruct((B, E, hw_p), x_nchw.dtype),
        grid_spec=pltpu.PrefetchScalarGridSpec(
            num_scalar_prefetch=0,
            grid=(B, nt),
            in_specs=[
                pl.BlockSpec((1, Ci, tm), lambda b, t: (b, 0, t)),
                pl.BlockSpec((E, Ci), lambda b, t: (0, 0)),
            ],
            out_specs=pl.BlockSpec((1, E, tm), lambda b, t: (b, 0, t)),
        ),
        compiler_params=pltpu.CompilerParams(
            dimension_semantics=("parallel", "parallel"),
            vmem_limit_bytes=vmem_limit),
    )(x_flat, w)
    if hw_p != HW:
        out = out[:, :, :HW]
    return out.reshape(B, E, H, W)


# ----------------------------------------------------------------------------
# Standalone global_embedder: Linear(feature_dim -> embed_dim)
# ----------------------------------------------------------------------------
def _linear_kernel(x_ref, w_ref, b_ref, o_ref):
    o_ref[...] = (jnp.dot(x_ref[...].astype(jnp.float32), w_ref[...],
                          preferred_element_type=jnp.float32)
                  + b_ref[...]).astype(o_ref.dtype)


def linear(x, w, b):
    B, F = x.shape
    E = w.shape[1]
    return pl.pallas_call(
        _linear_kernel,
        out_shape=jax.ShapeDtypeStruct((B, E), jnp.float32),
        grid_spec=pltpu.PrefetchScalarGridSpec(
            num_scalar_prefetch=0,
            grid=(1,),
            in_specs=[
                pl.BlockSpec((B, F), lambda i: (0, 0)),
                pl.BlockSpec((F, E), lambda i: (0, 0)),
                pl.BlockSpec((1, E), lambda i: (0, 0)),
            ],
            out_specs=pl.BlockSpec((B, E), lambda i: (0, 0)),
        ),
        compiler_params=pltpu.CompilerParams(
            dimension_semantics=("arbitrary",)),
    )(x, w, b.reshape(1, E))


# ----------------------------------------------------------------------------
# ImageEncoder (JAX/Pallas version)
# ----------------------------------------------------------------------------
class ImageEncoderPallas:
    def __init__(self, key, in_channels, interm_feature_dim, feature_dim, embed_dim):
        self.output_dim = embed_dim
        self.feature_dim = feature_dim
        self.interm_feature_dim = interm_feature_dim

        k = jax.random.split(key, 6)
        scale = 0.02
        # Backbone stand-in weights, stored [out, in] so kernels compute W @ X.
        self.w_layer3 = scale * jax.random.normal(k[0], (interm_feature_dim, in_channels), jnp.float32)
        self.b_layer3 = scale * jax.random.normal(k[1], (interm_feature_dim, 1), jnp.float32)
        self.w_layer4 = scale * jax.random.normal(k[2], (feature_dim, interm_feature_dim), jnp.float32)
        self.b_layer4 = scale * jax.random.normal(k[3], (feature_dim, 1), jnp.float32)

        # nn.Linear(feature_dim, embed_dim): [in, out] for x @ w, plus [out, in] for the fused path.
        self.global_embedder_w = scale * jax.random.normal(k[4], (feature_dim, embed_dim), jnp.float32)
        self.global_embedder_w_oi = jnp.transpose(self.global_embedder_w)     # [E, F]
        self.global_embedder_b = jnp.zeros((embed_dim,), jnp.float32)
        # nn.Conv2d(interm_feature_dim, embed_dim, kernel_size=1, bias=False)  ([out, in])
        self.local_embedder_w = scale * jax.random.normal(k[5], (embed_dim, interm_feature_dim), jnp.float32)

    # --- backbone stand-in + pool (resnet_forward), fused ---------------------
    def resnet_forward(self, x_nchw):
        return backbone_features(x_nchw, self.w_layer3, self.b_layer3,
                                 self.w_layer4, self.b_layer4)

    # --- forward ---------------------------------------------------------------
    def forward(self, x_nchw, get_local=False):
        global_ft, local_ft = self.resnet_forward(x_nchw)
        if get_local:
            return global_ft, local_ft
        return global_ft

    # --- generate_embeddings ---------------------------------------------------
    def generate_embeddings(self, global_features, local_features=None):
        global_emb = linear(global_features, self.global_embedder_w, self.global_embedder_b)
        local_emb = None
        if local_features is not None:
            local_emb = conv1x1_nchw(local_features, self.local_embedder_w)
        return global_emb, local_emb

    # --- fully fused fast path: forward(get_local=True) + generate_embeddings --
    def encode(self, x_nchw):
        return fused_encode(x_nchw, self.w_layer3, self.b_layer3,
                            self.w_layer4, self.b_layer4,
                            self.local_embedder_w,
                            self.global_embedder_w_oi, self.global_embedder_b)


# ----------------------------------------------------------------------------
if __name__ == "__main__":
    key = jax.random.PRNGKey(0)
    k_x, k_params = jax.random.split(key)

    B, C, H, W = 2, 4, 16, 16
    interm_feature_dim = 48
    feature_dim = 64
    embed_dim = 32

    x = jax.random.normal(k_x, (B, C, H, W), jnp.float32)
    enc = ImageEncoderPallas(k_params, C, interm_feature_dim, feature_dim, embed_dim)

    # Fully fused path (backbone + pool + both embedders in one pallas_call).
    global_ft, local_ft, global_emb, local_emb = enc.encode(x)
    # Module-API path (features kernel, then standalone embedder kernels).
    g2, l2 = enc.forward(x, get_local=True)
    ge2, le2 = enc.generate_embeddings(g2, l2)
    jax.block_until_ready((global_ft, local_ft, global_emb, local_emb, g2, l2, ge2, le2))

    assert global_ft.shape == (B, feature_dim)
    assert local_ft.shape == (B, interm_feature_dim, H, W)
    assert global_emb.shape == (B, embed_dim)
    assert local_emb.shape == (B, embed_dim, H, W)

    # Pure-JAX reference of the same stand-in computation.
    hp = jax.lax.Precision.HIGHEST
    xr = x.astype(jnp.float32)
    h1_ref = jnp.maximum(
        jnp.einsum("oi,bihw->bohw", enc.w_layer3, xr, precision=hp)
        + enc.b_layer3.reshape(1, -1, 1, 1), 0.0)
    h2_ref = jnp.maximum(
        jnp.einsum("oi,bihw->bohw", enc.w_layer4, h1_ref, precision=hp)
        + enc.b_layer4.reshape(1, -1, 1, 1), 0.0)
    g_ref = h2_ref.mean(axis=(2, 3))
    gemb_ref = g_ref @ enc.global_embedder_w + enc.global_embedder_b
    lemb_ref = jnp.einsum("oi,bihw->bohw", enc.local_embedder_w, h1_ref, precision=hp)

    def close(a, b):
        return jnp.allclose(a.astype(jnp.float32), b, rtol=3e-2, atol=3e-3)

    assert close(local_ft, h1_ref)
    assert close(global_ft, g_ref)
    assert close(global_emb, gemb_ref)
    assert close(local_emb, lemb_ref)
    assert close(l2, h1_ref)
    assert close(g2, g_ref)
    assert close(ge2, gemb_ref)
    assert close(le2, lemb_ref)

    print("KERNEL_OK")
</pallas_src>

<mosaic_0001>
module attributes {stable_mosaic.version = 11 : i64} {
  func.func @_fused_encode_kernel(%arg0: i32, %arg1: i32, %arg2: memref<1x4x256xf32, #tpu.memory_space<vmem>>, %arg3: memref<48x4xf32, #tpu.memory_space<vmem>>, %arg4: memref<48x1xf32, #tpu.memory_space<vmem>>, %arg5: memref<64x48xf32, #tpu.memory_space<vmem>>, %arg6: memref<64x1xf32, #tpu.memory_space<vmem>>, %arg7: memref<32x48xf32, #tpu.memory_space<vmem>>, %arg8: memref<32x64xf32, #tpu.memory_space<vmem>>, %arg9: memref<32x1xf32, #tpu.memory_space<vmem>>, %arg10: memref<1x48x256xbf16, #tpu.memory_space<vmem>>, %arg11: memref<1x64x1xf32, #tpu.memory_space<vmem>>, %arg12: memref<1x32x256xbf16, #tpu.memory_space<vmem>>, %arg13: memref<1x32x1xf32, #tpu.memory_space<vmem>>, %arg14: memref<64x1xf32, #tpu.memory_space<vmem>>) attributes {dimension_semantics = [#tpu.dimension_semantics<parallel>, #tpu.dimension_semantics<arbitrary>], iteration_bounds = array<i64: 2, 1>, scalar_prefetch = 0 : i64, scratch_operands = 1 : i64, tpu.core_type = #tpu.core_type<tc>, window_params = [{transform_indices = @transform_0, window_bounds = array<i64: 1, 4, 256>}, {pipeline_mode = #tpu.pipeline_mode<synchronous>, transform_indices = @transform_1, window_bounds = array<i64: 48, 4>}, {pipeline_mode = #tpu.pipeline_mode<synchronous>, transform_indices = @transform_2, window_bounds = array<i64: 48, 1>}, {pipeline_mode = #tpu.pipeline_mode<synchronous>, transform_indices = @transform_3, window_bounds = array<i64: 64, 48>}, {pipeline_mode = #tpu.pipeline_mode<synchronous>, transform_indices = @transform_4, window_bounds = array<i64: 64, 1>}, {pipeline_mode = #tpu.pipeline_mode<synchronous>, transform_indices = @transform_5, window_bounds = array<i64: 32, 48>}, {pipeline_mode = #tpu.pipeline_mode<synchronous>, transform_indices = @transform_6, window_bounds = array<i64: 32, 64>}, {pipeline_mode = #tpu.pipeline_mode<synchronous>, transform_indices = @transform_7, window_bounds = array<i64: 32, 1>}, {transform_indices = @transform_8, window_bounds = array<i64: 1, 48, 256>}, {transform_indices = @transform_9, window_bounds = array<i64: 1, 64, 1>}, {transform_indices = @transform_10, window_bounds = array<i64: 1, 32, 256>}, {transform_indices = @transform_11, window_bounds = array<i64: 1, 32, 1>}]} {
    %c0 = arith.constant 0 : index
    %c0_0 = arith.constant 0 : index
    %c0_1 = arith.constant 0 : index
    %0 = vector.load %arg2[%c0, %c0_0, %c0_1] : memref<1x4x256xf32, #tpu.memory_space<vmem>>, vector<1x4x256xf32>
    %1 = vector.shape_cast %0 : vector<1x4x256xf32> to vector<4x256xf32>
    %c0_2 = arith.constant 0 : index
    %c0_3 = arith.constant 0 : index
    %2 = vector.load %arg3[%c0_2, %c0_3] : memref<48x4xf32, #tpu.memory_space<vmem>>, vector<48x4xf32>
    %cst = arith.constant dense<0.000000e+00> : vector<48x256xf32>
    %3 = tpu.matmul %2, %1, %cst {dimension_numbers = #tpu.dot_dimension_numbers<[1], [0], [0], [1], [0, 0, 1, 1], [], []>} : vector<48x4xf32>, vector<4x256xf32>, vector<48x256xf32> -> vector<48x256xf32>
    %c0_4 = arith.constant 0 : index
    %c0_5 = arith.constant 0 : index
    %4 = vector.load %arg4[%c0_4, %c0_5] : memref<48x1xf32, #tpu.memory_space<vmem>>, vector<48x1xf32>
    %5 = vector.broadcast %4 : vector<48x1xf32> to vector<48x256xf32>
    %6 = arith.addf %3, %5 : vector<48x256xf32>
    %cst_6 = arith.constant 0.000000e+00 : f32
    %7 = vector.broadcast %cst_6 : f32 to vector<48x256xf32>
    %8 = arith.maximumf %6, %7 : vector<48x256xf32>
    %9 = arith.truncf %8 : vector<48x256xf32> to vector<48x256xbf16>
    %c0_7 = arith.constant 0 : index
    %c0_8 = arith.constant 0 : index
    %c0_9 = arith.constant 0 : index
    %10 = vector.load %arg10[%c0_7, %c0_8, %c0_9] : memref<1x48x256xbf16, #tpu.memory_space<vmem>>, vector<1x48x256xbf16>
    %11 = vector.shape_cast %10 : vector<1x48x256xbf16> to vector<48x256xbf16>
    %12 = vector.shape_cast %9 : vector<48x256xbf16> to vector<1x48x256xbf16>
    tpu.vector_store %arg10[%c0_7, %c0_8, %c0_9], %12 {strides = array<i32>} : memref<1x48x256xbf16, #tpu.memory_space<vmem>>, vector<1x48x256xbf16>,
    %c0_10 = arith.constant 0 : index
    %c0_11 = arith.constant 0 : index
    %13 = vector.load %arg7[%c0_10, %c0_11] : memref<32x48xf32, #tpu.memory_space<vmem>>, vector<32x48xf32>
    %cst_12 = arith.constant dense<0.000000e+00> : vector<32x256xf32>
    %14 = tpu.matmul %13, %8, %cst_12 {dimension_numbers = #tpu.dot_dimension_numbers<[1], [0], [0], [1], [0, 0, 1, 1], [], []>} : vector<32x48xf32>, vector<48x256xf32>, vector<32x256xf32> -> vector<32x256xf32>
    %15 = arith.truncf %14 : vector<32x256xf32> to vector<32x256xbf16>
    %c0_13 = arith.constant 0 : index
    %c0_14 = arith.constant 0 : index
    %c0_15 = arith.constant 0 : index
    %16 = vector.load %arg12[%c0_13, %c0_14, %c0_15] : memref<1x32x256xbf16, #tpu.memory_space<vmem>>, vector<1x32x256xbf16>
    %17 = vector.shape_cast %16 : vector<1x32x256xbf16> to vector<32x256xbf16>
    %18 = vector.shape_cast %15 : vector<32x256xbf16> to vector<1x32x256xbf16>
    tpu.vector_store %arg12[%c0_13, %c0_14, %c0_15], %18 {strides = array<i32>} : memref<1x32x256xbf16, #tpu.memory_space<vmem>>, vector<1x32x256xbf16>,
    %c0_16 = arith.constant 0 : index
    %c0_17 = arith.constant 0 : index
    %19 = vector.load %arg5[%c0_16, %c0_17] : memref<64x48xf32, #tpu.memory_space<vmem>>, vector<64x48xf32>
    %cst_18 = arith.constant dense<0.000000e+00> : vector<64x256xf32>
    %20 = tpu.matmul %19, %8, %cst_18 {dimension_numbers = #tpu.dot_dimension_numbers<[1], [0], [0], [1], [0, 0, 1, 1], [], []>} : vector<64x48xf32>, vector<48x256xf32>, vector<64x256xf32> -> vector<64x256xf32>
    %c0_19 = arith.constant 0 : index
    %c0_20 = arith.constant 0 : index
    %21 = vector.load %arg6[%c0_19, %c0_20] : memref<64x1xf32, #tpu.memory_space<vmem>>, vector<64x1xf32>
    %22 = vector.broadcast %21 : vector<64x1xf32> to vector<64x256xf32>
    %23 = arith.addf %20, %22 : vector<64x256xf32>
    %cst_21 = arith.constant 0.000000e+00 : f32
    %24 = vector.broadcast %cst_21 : f32 to vector<64x256xf32>
    %25 = arith.maximumf %23, %24 : vector<64x256xf32>
    %c0_i32 = arith.constant 0 : i32
    %26 = arith.cmpi eq, %arg1, %c0_i32 : i32
    %27 = arith.extui %26 : i1 to i32
    %c0_i32_22 = arith.constant 0 : i32
    %28 = arith.cmpi ne, %27, %c0_i32_22 : i32
    scf.if %28 {
      %cst_30 = arith.constant 0.000000e+00 : f32
      %37 = vector.broadcast %cst_30 : f32 to vector<64x1xf32>
      %c0_31 = arith.constant 0 : index
      %c0_32 = arith.constant 0 : index
      %38 = vector.load %arg14[%c0_31, %c0_32] : memref<64x1xf32, #tpu.memory_space<vmem>>, vector<64x1xf32>
      tpu.vector_store %arg14[%c0_31, %c0_32], %37 {strides = array<i32>} : memref<64x1xf32, #tpu.memory_space<vmem>>, vector<64x1xf32>,
    } else {
    }
    %c0_23 = arith.constant 0 : index
    %c0_24 = arith.constant 0 : index
    %29 = vector.load %arg14[%c0_23, %c0_24] : memref<64x1xf32, #tpu.memory_space<vmem>>, vector<64x1xf32>
    %cst_25 = arith.constant dense<0.000000e+00> : vector<64xf32>
    %30 = vector.multi_reduction <add>, %25, %cst_25 [1] : vector<64x256xf32> to vector<64xf32>
    %31 = vector.shape_cast %30 : vector<64xf32> to vector<64x1xf32>
    %32 = arith.addf %29, %31 : vector<64x1xf32>
    %c0_26 = arith.constant 0 : index
    %c0_27 = arith.constant 0 : index
    %33 = vector.load %arg14[%c0_26, %c0_27] : memref<64x1xf32, #tpu.memory_space<vmem>>, vector<64x1xf32>
    tpu.vector_store %arg14[%c0_26, %c0_27], %32 {strides = array<i32>} : memref<64x1xf32, #tpu.memory_space<vmem>>, vector<64x1xf32>,
    %c0_i32_28 = arith.constant 0 : i32
    %34 = arith.cmpi eq, %arg1, %c0_i32_28 : i32
    %35 = arith.extui %34 : i1 to i32
    %c0_i32_29 = arith.constant 0 : i32
    %36 = arith.cmpi ne, %35, %c0_i32_29 : i32
    scf.if %36 {
      %c0_30 = arith.constant 0 : index
      %c0_31 = arith.constant 0 : index
      %37 = vector.load %arg14[%c0_30, %c0_31] : memref<64x1xf32, #tpu.memory_space<vmem>>, vector<64x1xf32>
      %cst_32 = arith.constant 3.906250e-03 : f32
      %38 = vector.broadcast %cst_32 : f32 to vector<64x1xf32>
      %39 = arith.mulf %37, %38 : vector<64x1xf32>
      %c0_33 = arith.constant 0 : index
      %c0_34 = arith.constant 0 : index
      %c0_35 = arith.constant 0 : index
      %40 = vector.load %arg11[%c0_33, %c0_34, %c0_35] : memref<1x64x1xf32, #tpu.memory_space<vmem>>, vector<1x64x1xf32>
      %41 = vector.shape_cast %40 : vector<1x64x1xf32> to vector<64x1xf32>
      %42 = vector.shape_cast %39 : vector<64x1xf32> to vector<1x64x1xf32>
      tpu.vector_store %arg11[%c0_33, %c0_34, %c0_35], %42 {strides = array<i32>} : memref<1x64x1xf32, #tpu.memory_space<vmem>>, vector<1x64x1xf32>,
      %c0_36 = arith.constant 0 : index
      %c0_37 = arith.constant 0 : index
      %43 = vector.load %arg8[%c0_36, %c0_37] : memref<32x64xf32, #tpu.memory_space<vmem>>, vector<32x64xf32>
      %cst_38 = arith.constant dense<0.000000e+00> : vector<32x1xf32>
      %44 = tpu.matmul %43, %39, %cst_38 {dimension_numbers = #tpu.dot_dimension_numbers<[1], [0], [0], [1], [0, 0, 1, 1], [], []>} : vector<32x64xf32>, vector<64x1xf32>, vector<32x1xf32> -> vector<32x1xf32>
      %c0_39 = arith.constant 0 : index
      %c0_40 = arith.constant 0 : index
      %45 = vector.load %arg9[%c0_39, %c0_40] : memref<32x1xf32, #tpu.memory_space<vmem>>, vector<32x1xf32>
      %46 = arith.addf %44, %45 : vector<32x1xf32>
      %c0_41 = arith.constant 0 : index
      %c0_42 = arith.constant 0 : index
      %c0_43 = arith.constant 0 : index
      %47 = vector.load %arg13[%c0_41, %c0_42, %c0_43] : memref<1x32x1xf32, #tpu.memory_space<vmem>>, vector<1x32x1xf32>
      %48 = vector.shape_cast %47 : vector<1x32x1xf32> to vector<32x1xf32>
      %49 = vector.shape_cast %46 : vector<32x1xf32> to vector<1x32x1xf32>
      tpu.vector_store %arg13[%c0_41, %c0_42, %c0_43], %49 {strides = array<i32>} : memref<1x32x1xf32, #tpu.memory_space<vmem>>, vector<1x32x1xf32>,
    } else {
    }
    return
  }
  func.func @transform_0(%arg0: i32, %arg1: i32) -> (i32, i32, i32) {
    %c0_i32 = arith.constant 0 : i32
    %c0_i32_0 = arith.constant 0 : i32
    return %arg0, %c0_i32, %arg1 : i32, i32, i32
  }
  func.func @transform_1(%arg0: i32, %arg1: i32) -> (i32, i32) {
    %c0_i32 = arith.constant 0 : i32
    %c0_i32_0 = arith.constant 0 : i32
    %c0_i32_1 = arith.constant 0 : i32
    return %c0_i32, %c0_i32_0 : i32, i32
  }
  func.func @transform_2(%arg0: i32, %arg1: i32) -> (i32, i32) {
    %c0_i32 = arith.constant 0 : i32
    %c0_i32_0 = arith.constant 0 : i32
    %c0_i32_1 = arith.constant 0 : i32
    return %c0_i32, %c0_i32_0 : i32, i32
  }
  func.func @transform_3(%arg0: i32, %arg1: i32) -> (i32, i32) {
    %c0_i32 = arith.constant 0 : i32
    %c0_i32_0 = arith.constant 0 : i32
    %c0_i32_1 = arith.constant 0 : i32
    return %c0_i32, %c0_i32_0 : i32, i32
  }
  func.func @transform_4(%arg0: i32, %arg1: i32) -> (i32, i32) {
    %c0_i32 = arith.constant 0 : i32
    %c0_i32_0 = arith.constant 0 : i32
    %c0_i32_1 = arith.constant 0 : i32
    return %c0_i32, %c0_i32_0 : i32, i32
  }
  func.func @transform_5(%arg0: i32, %arg1: i32) -> (i32, i32) {
    %c0_i32 = arith.constant 0 : i32
    %c0_i32_0 = arith.constant 0 : i32
    %c0_i32_1 = arith.constant 0 : i32
    return %c0_i32, %c0_i32_0 : i32, i32
  }
  func.func @transform_6(%arg0: i32, %arg1: i32) -> (i32, i32) {
    %c0_i32 = arith.constant 0 : i32
    %c0_i32_0 = arith.constant 0 : i32
    %c0_i32_1 = arith.constant 0 : i32
    return %c0_i32, %c0_i32_0 : i32, i32
  }
  func.func @transform_7(%arg0: i32, %arg1: i32) -> (i32, i32) {
    %c0_i32 = arith.constant 0 : i32
    %c0_i32_0 = arith.constant 0 : i32
    %c0_i32_1 = arith.constant 0 : i32
    return %c0_i32, %c0_i32_0 : i32, i32
  }
  func.func @transform_8(%arg0: i32, %arg1: i32) -> (i32, i32, i32) {
    %c0_i32 = arith.constant 0 : i32
    %c0_i32_0 = arith.constant 0 : i32
    return %arg0, %c0_i32, %arg1 : i32, i32, i32
  }
  func.func @transform_9(%arg0: i32, %arg1: i32) -> (i32, i32, i32) {
    %c0_i32 = arith.constant 0 : i32
    %c0_i32_0 = arith.constant 0 : i32
    %c0_i32_1 = arith.constant 0 : i32
    return %arg0, %c0_i32, %c0_i32_0 : i32, i32, i32
  }
  func.func @transform_10(%arg0: i32, %arg1: i32) -> (i32, i32, i32) {
    %c0_i32 = arith.constant 0 : i32
    %c0_i32_0 = arith.constant 0 : i32
    return %arg0, %c0_i32, %arg1 : i32, i32, i32
  }
  func.func @transform_11(%arg0: i32, %arg1: i32) -> (i32, i32, i32) {
    %c0_i32 = arith.constant 0 : i32
    %c0_i32_0 = arith.constant 0 : i32
    %c0_i32_1 = arith.constant 0 : i32
    return %arg0, %c0_i32, %c0_i32_0 : i32, i32, i32
  }
}

</mosaic_0001>

<bundles_post_ra>
// kernel: tpu_custom_call.1
= control target key start
LH: loop header
LB: loop body
LE: loop exit
PB: predicated region body
PF: predicated region fallthrough
CT: control target
= control target key end

     0   :  { %s2213_s0 = inlined_call_operand.vmem [shape: f32[2,4,256], index: 0, kind: input, shape index: {}]   ;;  %s2214_s1 = inlined_call_operand.vmem [shape: f32[48,4], index: 1, kind: input, shape index: {}]   ;;  %s2215_s2 = inlined_call_operand.vmem [shape: f32[48,1], index: 2, kind: input, shape index: {}]   ;;  %s2216_s3 = inlined_call_operand.vmem [shape: f32[64,48], index: 3, kind: input, shape index: {}]   ;;  %s2217_s4 = inlined_call_operand.vmem [shape: f32[64,1], index: 4, kind: input, shape index: {}]   ;;  %s2218_s5 = inlined_call_operand.vmem [shape: f32[32,48], index: 5, kind: input, shape index: {}]   ;;  %s2219_s6 = inlined_call_operand.vmem [shape: f32[32,64], index: 6, kind: input, shape index: {}]   ;;  %s2220_s7 = inlined_call_operand.vmem [shape: f32[32,1], index: 7, kind: input, shape index: {}]   ;;  %s2221_s8 = inlined_call_operand.hbm [shape: bf16[2,48,256], index: 8, kind: output, shape index: {0}]   ;;  %s2222_s9 = inlined_call_operand.vmem [shape: f32[2,64,1], index: 9, kind: output, shape index: {1}]   ;;  %s2223_s10 = inlined_call_operand.hbm [shape: bf16[2,32,256], index: 10, kind: output, shape index: {2}]   ;;  %s2224_s11 = inlined_call_operand.vmem [shape: f32[2,32,1], index: 11, kind: output, shape index: {3}]  }
   0x1   :  { %2227 = sst [smem:[#allocation12_spill]] %s2213_s0 }
   0x2   :  { %2228 = sst [smem:[#allocation13_spill]] %s2214_s1 }
   0x3   :  { %2229 = sst [smem:[#allocation14_spill]] %s2215_s2 }
   0x4   :  { %2230 = sst [smem:[#allocation15_spill]] %s2216_s3 }
   0x5   :  { %2231 = sst [smem:[#allocation16_spill]] %s2217_s4 }
   0x6   :  { %17 = vsyncpa [#allocation4], 0 }
   0x7   :  { %19 = vsyncpa [#allocation4 + $0x1], 0 }
   0x8   :  { %20 = vsyncpa [#allocation6], 0 }
   0x9   :  { %22 = vsyncpa [#allocation6 + $0x1], 0  ;;  %s1828_s17 = smov 0   ;;  %s1830_s18 = smov 0  }
   0xa   :  { %s1832_s19 = smov 0   ;;  %s1834_s20 = smov 0  }
   0xb   :  { %s1836_s21 = smov 0   ;;  %s1838_s22 = smov 0  }
   0xc LB: > { %2232 = sst [smem:[#allocation9_spill]] %s1756_s21  ;;  %s1439_s23 = sadd.s32 4294967295, %s1760_s22   ;;  %s1760_s22 = sphi %s1838_s22, %s28_s22   ;;  %s1756_s21 = sphi %s1836_s21, %s2246_s21   ;;  %s1752_s20 = sphi %s1834_s20, %s2245_s20   ;;  %s1748_s19 = sphi %s1832_s19, %s2249_s19   ;;  %s1744_s18 = sphi %s1830_s18, %s2248_s18   ;;  %s1740_s17 = sphi %s1828_s17, %s2247_s17  }
   0xd   : > { %s1440_s24 = sadd.s32 4294967294, %s1760_s22   ;;  %s40_s25 = sadd.s32 1, %s1756_s21 }
   0xe   : > { %s224_s26 = sadd.s32 1, %s1748_s19  ;;  %p42_p0 = scmp.ge.s32.totalorder %s40_s25, 2 }
   0xf   : > { %p234_p1 = scmp.ne.s32.totalorder %s1748_s19, %s1744_s18  ;;  %p235_p2 = scmp.eq.s32.totalorder %s1439_s23, 1 }
  0x10   : > { %p240_p3 = scmp.ne.s32.totalorder %s1744_s18, %s1740_s17  ;;  %s2251_s25 = smov (%p42_p0, %s40_s25), 0 }
  0x11   : > { %2233 = sst [smem:[#allocation10_spill]] %s2251_s25  ;;  %p1868_p4 = por %p235_p2, %p234_p1 }
  0x12   : > { %p241_p5 = scmp.eq.s32.totalorder %s1440_s24, 1  ;;  %s219_s28 = ssub.s32 %s1756_s21, %s2251_s25 }
  0x13   : > { %p1443_p6 = scmp.ge.s32.totalorder %s1760_s22, 1  ;;  %p222_p7 = scmp.eq.s32.totalorder %s219_s28, 0 }
  0x14   : > { %p1875_p8 = por %p241_p5, %p240_p3  ;;  %p373_p9 = scmp.lt.s32.totalorder %s1760_s22, 3 }
  0x15   : > { %s1881_s30 = scalar_select %p222_p7, %s1748_s19, %s224_s26  }
  0x16   : > { %p374_p10 = pnand %p1443_p6, %p373_p9 }
  0x17   : > { %2236 = sst [smem:[#allocation11_spill]] %s1881_s30  ;;  %p433_p11 = scmp.lt.s32.totalorder (!%p374_p10), %s1752_s20, 1  ;;  %v1762_v0 = vmov (!%p374_p10), 0.0   ;;  %v1763_v1 = vmov (!%p374_p10), 0   ;;  %vm518_vm0 = vcmask (!%p374_p10), 1043456   ;;  %vm499_vm1 = vcmask (!%p374_p10), 31744  }
  0x18   : > { %377 = sbr.rel (%p374_p10) target bundleno = 902 (0x386), region = 52  ;;  %587 = vmatprep.mubr.f32.mxu0 (!%p374_p10), %v1762_v0  ;;  %605 = vmatprep.mubr.f32.mxu1 (!%p374_p10), %v1762_v0  ;;  %s2237_s2 = sld [smem:[#allocation14_spill]] (!%p374_p10)  ;;  %vm682_vm2 = vcmask (!%p374_p10), 392192   ;;  %vm1025_vm3 = vcmask (!%p374_p10), 7168   ;;  %vm1118_vm4 = vcmask (!%p374_p10), 523264  }
  0x19   : > { %1647 = vset.pattern.permute.xlu0 (!%p374_p10), %v1763_v1  ;;  %1648 = vset.pattern.permute.xlu1 (!%p374_p10), %v1763_v1  ;;  %s2238_s0 = sld [smem:[#allocation12_spill]] (!%p374_p10)  ;;  %s2239_s1 = sld [smem:[#allocation13_spill]] (!%p374_p10)  ;;  %1026 = vst.msk [vmem:[#allocation2] sm:$0xff] (!%p374_p10), %vm1025_vm3, %v1762_v0  ;;  %1027 = vst.msk [vmem:[#allocation2 + $0x8] sm:$0xff] (!%p374_p10), %vm1025_vm3, %v1762_v0 }
  0x1a   : > { %s2240_s4 = sld [smem:[#allocation16_spill]] (!%p374_p10)  ;;  %s2241_s3 = sld [smem:[#allocation15_spill]] (!%p374_p10)  ;;  %1028 = vst.msk [vmem:[#allocation2 + $0x10] sm:$0xff] (!%p374_p10), %vm1025_vm3, %v1762_v0  ;;  %1029 = vst.msk [vmem:[#allocation2 + $0x18] sm:$0xff] (!%p374_p10), %vm1025_vm3, %v1762_v0 }
  0x1b   : > { %1030 = vst.msk [vmem:[#allocation2 + $0x20] sm:$0xff] (!%p374_p10), %vm1025_vm3, %v1762_v0  ;;  %1031 = vst.msk [vmem:[#allocation2 + $0x28] sm:$0xff] (!%p374_p10), %vm1025_vm3, %v1762_v0  ;;  %s1582_s30 = smul.u32 (!%p374_p10), 768, %s1752_s20 }
  0x1c   : > { %1032 = vst.msk [vmem:[#allocation2 + $0x30] sm:$0xff] (!%p374_p10), %vm1025_vm3, %v1762_v0  ;;  %1033 = vst.msk [vmem:[#allocation2 + $0x38] sm:$0xff] (!%p374_p10), %vm1025_vm3, %v1762_v0 }
  0x1e   : > { %v461_v2 = vld [vmem:[%s2237_s2] sm:$0xff] (!%p374_p10)  ;;  %v463_v3 = vld [vmem:[%s2237_s2 + $0x10] sm:$0xff] (!%p374_p10)  ;;  %v462_v4 = vld [vmem:[%s2237_s2 + $0x8] sm:$0xff] (!%p374_p10) }
  0x1f   : > { %s1887_s12 = scalar_select %p433_p11, %s1752_s20, 1  ;;  %469 = vperm.xlu0 %1647, %v461_v2   ;;  %479 = vperm.xlu1 %1648, %v463_v3   ;;  %v464_v5 = vld [vmem:[%s2237_s2 + $0x18] sm:$0xff]  ;;  %v455_v8 = vld [vmem:[%s2239_s1] sm:$0xff]  ;;  %v466_v11 = vld [vmem:[%s2237_s2 + $0x28] sm:$0xff] }
  0x20   : > { %v458_v9 = vld [vmem:[%s2239_s1 + $0x18] sm:$0xff]  ;;  %v465_v10 = vld [vmem:[%s2237_s2 + $0x20] sm:$0xff]  ;;  %v456_v12 = vld [vmem:[%s2239_s1 + $0x8] sm:$0xff] }
  0x21   : > { %s1491_s23 = sshll.u32 %s1887_s12, 3  ;;  %v459_v13 = vld [vmem:[%s2239_s1 + $0x20] sm:$0xff]  ;;  %v821_v15 = vld [vmem:[%s2240_s4 + $0x8] sm:$0xff]  ;;  %v457_v16 = vld [vmem:[%s2239_s1 + $0x10] sm:$0xff] }
  0x22   : > { %s440_s13 = scalar_lea.vmem %s2238_s0, %s1491_s23  ;;  %v820_v14 = vld [vmem:[%s2240_s4] sm:$0xff]  ;;  %v460_v17 = vld [vmem:[%s2239_s1 + $0x28] sm:$0xff]  ;;  %v822_v18 = vld [vmem:[%s2240_s4 + $0x10] sm:$0xff] }
  0x23   : > { %v454_v6 = vld [vmem:[%s440_s13] sm:$0xff]  ;;  %474 = vperm.xlu0 %1647, %v462_v4   ;;  %484 = vperm.xlu1 %1648, %v464_v5   ;;  %v823_v19 = vld [vmem:[%s2240_s4 + $0x18] sm:$0xff]  ;;  %v825_v21 = vld [vmem:[%s2240_s4 + $0x28] sm:$0xff]  ;;  %s1966_s13 = sand.u32 1, %s1744_s18  }
  0x24   : > { %v498_v7 = vcombine.high %v454_v6, %v454_v6  ;;  %v824_v20 = vld [vmem:[%s2240_s4 + $0x20] sm:$0xff]  ;;  %v826_v22 = vld [vmem:[%s2240_s4 + $0x30] sm:$0xff]  ;;  %v827_v23 = vld [vmem:[%s2240_s4 + $0x38] sm:$0xff]  ;;  %s1581_s14 = smul.u32 48, %s1966_s13  ;;  %s1444_s16 = sshll.u32 %s1966_s13, 5 }
  0x25   : > { %s424_s24 = scalar_lea.vmem [#allocation5], %s1444_s16 }
  0x26   : > { %1451 = vmatprep.subr.msk.mxu0 %vm518_vm0, %v498_v7  ;;  %1579 = vmatprep.subr.msk.mxu1 %vm518_vm0, %v498_v7  ;;  %s1969_s15 = scalar_lea.vmem [#allocation3], %s1581_s14  ;;  %s1492_s14 = sshll.u32 %s1887_s12, 6 }
  0x27   : > { %1452 = vmatpush1.msk.msra.mxu0 %vm518_vm0, %v454_v6  ;;  %1580 = vmatpush1.msk.msra.mxu1 %vm518_vm0, %v454_v6  ;;  %s2061_s21 = scalar_lea.vmem %s2222_s9, %s1492_s14  ;;  %s1251_s25 = sshll.u32 %s1969_s15, 4  ;;  %s2108_s25 = int_to_ptr.vmem [resolvable:$true] %s1251_s25 }
  0x28   : > { %1453 = vmatmul.mubr.msk.f32.vlgmr.msra.gmra.mrb[0].mxu0 %vm499_vm1, %v455_v8  ;;  %1456 = vmatmul.mubr.msk.f32.vlgmr.msra.gmra.mrb[0].mxu1 %vm499_vm1, %v458_v9  ;;  %s2106_s14 = scalar_lea.hbm %s2221_s8, %s1582_s30  ;;  %s1650_s0 = scalar_lea.vmem %s2108_s25, 768 }
  0x29   : > { %593 = vmatprep.mubr.f32.mxu0 %v1762_v0  ;;  %611 = vmatprep.mubr.f32.mxu1 %v1762_v0  ;;  %p1651_p12 = scmp.ne.s32.totalorder %s2108_s25, %s1650_s0 }
  0x2a   : > { %489 = vperm.xlu0 %1647, %v465_v10   ;;  %494 = vperm.xlu1 %1648, %v466_v11  }
  0x2b   : > { %p1652_p13 = pnand %p1651_p12, %p1868_p4 }
  0x2c   : > { %1454 = vmatmul.mubr.msk.f32.gmra.mrb[2].mxu0 %vm499_vm1, %v456_v12  ;;  %1457 = vmatmul.mubr.msk.f32.gmra.mrb[2].mxu1 %vm499_vm1, %v459_v13 }
  0x2d   : > { %599 = vmatprep.mubr.f32.mxu0 %v1762_v0  ;;  %617 = vmatprep.mubr.f32.mxu1 %v1762_v0  ;;  %p1653_p0 = pneg %p1652_p13 }
  0x2e   : > { %830 = vperm.xlu0 %1647, %v820_v14   ;;  %835 = vperm.xlu1 %1648, %v821_v15   ;;  %v812_v15 = vld [vmem:[%s2241_s3] sm:$0xff] }
  0x30   : > { %1455 = vmatmul.mubr.msk.f32.gmra.mrb[4].mxu0 %vm499_vm1, %v457_v16  ;;  %1458 = vmatmul.mubr.msk.f32.gmra.mrb[4].mxu1 %vm499_vm1, %v460_v17  ;;  %v813_v16 = vld [vmem:[%s2241_s3 + $0x8] sm:$0xff]  ;;  %v814_v17 = vld [vmem:[%s2241_s3 + $0x10] sm:$0xff] }
  0x31   : > { %956 = vmatprep.mubr.f32.mxu0 %v1762_v0  ;;  %759 = vmatprep.mubr.f32.mxu1 %v1762_v0 }
  0x32   : > { %840 = vperm.xlu0 %1647, %v822_v18   ;;  %845 = vperm.xlu1 %1648, %v823_v19   ;;  %v815_v18 = vld [vmem:[%s2241_s3 + $0x18] sm:$0xff]  ;;  %v816_v19 = vld [vmem:[%s2241_s3 + $0x20] sm:$0xff] }
  0x36   : > { %850 = vperm.xlu0 %1647, %v824_v20   ;;  %855 = vperm.xlu1 %1648, %v825_v21   ;;  %v817_v20 = vld [vmem:[%s2241_s3 + $0x28] sm:$0xff]  ;;  %v818_v21 = vld [vmem:[%s2241_s3 + $0x30] sm:$0xff] }
  0x3a   : > { %860 = vperm.xlu0 %1647, %v826_v22   ;;  %865 = vperm.xlu1 %1648, %v827_v23   ;;  %v819_v22 = vld [vmem:[%s2241_s3 + $0x38] sm:$0xff] }
  0x9e   : > { %v470_v24 = vpop.permute.xlu0 %469  ;;  %v480_v25 = vpop.permute.xlu1 %479 }
  0xa2   : > { %v475_v26 = vpop.permute.xlu0 %474  ;;  %v485_v27 = vpop.permute.xlu1 %484 }
  0xa9   : > { %v490_v36 = vpop.permute.xlu0 %489  ;;  %v495_v51 = vpop.permute.xlu1 %494 }
  0xad   : > { %v831_v23 = vpop.permute.xlu0 %830 }
  0xfb   : > { %v589_v28 = vpop.f32.mrb[0].mxu0  ;;  %v607_v29 = vpop.f32.mrb[0].mxu1 }
  0xfc   : > { %v590_v30 = vadd.f32 %v589_v28, %v470_v24  ;;  %v591_v31 = vpop.f32.mrb[1].mxu0  ;;  %v608_v32 = vadd.f32 %v607_v29, %v485_v27  ;;  %v609_v33 = vpop.f32.mrb[1].mxu1 }
  0xfd   : > { %v592_v34 = vadd.f32 %v591_v31, %v470_v24  ;;  %v610_v35 = vadd.f32 %v609_v33, %v485_v27  ;;  %v836_v29 = vpop.permute.xlu1 %835 }
  0xfe   : > { %v624_v37 = vmax.f32 %v590_v30, 0.0  ;;  %v630_v38 = vmax.f32 %v608_v32, 0.0 }
  0xff   : > { %v625_v39 = vmax.f32 %v592_v34, 0.0  ;;  %v631_v40 = vmax.f32 %v610_v35, 0.0  ;;  %v595_v41 = vpop.f32.mrb[2].mxu0  ;;  %v613_v42 = vpop.f32.mrb[2].mxu1 }
 0x100   : > { %v596_v43 = vadd.f32 %v595_v41, %v475_v26  ;;  %v614_v44 = vadd.f32 %v613_v42, %v490_v36  ;;  %v597_v45 = vpop.f32.mrb[3].mxu0  ;;  %v615_v46 = vpop.f32.mrb[3].mxu1 }
 0x101   : > { %v1494_v47 = vpack.c.bf16 %v625_v39, %v624_v37  ;;  %v1497_v48 = vpack.c.bf16 %v631_v40, %v630_v38  ;;  %v598_v49 = vadd.f32 %v597_v45, %v475_v26  ;;  %v616_v50 = vadd.f32 %v615_v46, %v490_v36  ;;  %v846_v45 = vpop.permute.xlu1 %845 }
 0x102   : > { %v626_v52 = vmax.f32 %v596_v43, 0.0  ;;  %v632_v53 = vmax.f32 %v614_v44, 0.0 }
 0x103   : > { %672 = vst [vmem:[%s1969_s15] sm:$0xff] %v1494_v47  ;;  %675 = vst [vmem:[%s1969_s15 + $0x18] sm:$0xff] %v1497_v48  ;;  %v627_v54 = vmax.f32 %v598_v49, 0.0  ;;  %v633_v55 = vmax.f32 %v616_v50, 0.0  ;;  %v601_v56 = vpop.f32.mrb[4].mxu0  ;;  %v619_v57 = vpop.f32.mrb[4].mxu1 }
 0x104   : > { %v1541_v58 = vpack.c.bf16 %v626_v52, %v624_v37  ;;  %v602_v59 = vadd.f32 %v601_v56, %v480_v25  ;;  %v620_v60 = vadd.f32 %v619_v57, %v495_v51  ;;  %v603_v61 = vpop.f32.mrb[5].mxu0  ;;  %v621_v62 = vpop.f32.mrb[5].mxu1 }
 0x105   : > { %v1495_v63 = vpack.c.bf16 %v627_v54, %v626_v52  ;;  %v1539_v1 = vpack.c.bf16 %v627_v54, %v625_v39  ;;  %v1498_v2 = vpack.c.bf16 %v633_v55, %v632_v53  ;;  %v604_v3 = vadd.f32 %v603_v61, %v480_v25  ;;  %v841_v37 = vpop.permute.xlu0 %840  ;;  %v856_v61 = vpop.permute.xlu1 %855 }
 0x106   : > { %v628_v4 = vmax.f32 %v602_v59, 0.0  ;;  %v634_v5 = vmax.f32 %v620_v60, 0.0  ;;  %v622_v6 = vadd.f32 %v621_v62, %v495_v51 }
 0x107   : > { %673 = vst [vmem:[%s1969_s15 + $0x8] sm:$0xff] %v1495_v63  ;;  %676 = vst [vmem:[%s1969_s15 + $0x20] sm:$0xff] %v1498_v2  ;;  %v629_v7 = vmax.f32 %v604_v3, 0.0  ;;  %1540 = vmatprep.subr.bf16.mxu1 %v1539_v1  ;;  %1552 = vmatprep.subr.bf16.mxu0 %v1539_v1 }
 0x108   : > { %v1545_v8 = vpack.c.bf16 %v630_v38, %v628_v4  ;;  %v1549_v9 = vpack.c.bf16 %v634_v5, %v632_v53  ;;  %v635_v10 = vmax.f32 %v622_v6, 0.0  ;;  %1542 = vmatpush1.bf16.msra.mxu1 %v1541_v58  ;;  %1554 = vmatpush1.bf16.msra.mxu0 %v1541_v58 }
 0x109   : > { %v1496_v11 = vpack.c.bf16 %v629_v7, %v628_v4  ;;  %v1543_v12 = vpack.c.bf16 %v631_v40, %v629_v7  ;;  %v851_v53 = vpop.permute.xlu0 %850 }
 0x10a   : > { %v1499_v13 = vpack.c.bf16 %v635_v10, %v634_v5  ;;  %v1547_v14 = vpack.c.bf16 %v635_v10, %v633_v55 }
 0x10b   : > { %674 = vst [vmem:[%s1969_s15 + $0x10] sm:$0xff] %v1496_v11  ;;  %1544 = vmatprep.subr.bf16.mxu1 %v1543_v12  ;;  %1556 = vmatprep.subr.bf16.mxu0 %v1543_v12 }
 0x10c   : > { %677 = vst [vmem:[%s1969_s15 + $0x28] sm:$0xff] %v1499_v13  ;;  %1546 = vmatpush1.bf16.msra.mxu1 %v1545_v8  ;;  %1558 = vmatpush1.bf16.msra.mxu0 %v1545_v8  ;;  %s1764_s15 = smov [#allocation3]  }
 0x10d   : > { %1548 = vmatprep.subr.bf16.mxu1 %v1547_v14  ;;  %1560 = vmatprep.subr.bf16.mxu0 %v1547_v14  ;;  %v861_v6 = vpop.permute.xlu0 %860  ;;  %v866_v14 = vpop.permute.xlu1 %865 }
 0x110   : > { %1550 = vmatpush1.bf16.msra.mxu1 %v1549_v9  ;;  %1562 = vmatpush1.bf16.msra.mxu0 %v1549_v9 }
 0x113   : > { %1473 = vmatmul.mubr.msk.f32.vlgmr.msra.gmra.mrb[6].mxu0 %vm682_vm2, %v812_v15 }
 0x114   : > { %962 = vmatprep.mubr.f32.mxu0 %v1762_v0 }
 0x117   : > { %1474 = vmatmul.mubr.msk.f32.gmra.mrb[8].mxu0 %vm682_vm2, %v813_v16 }
 0x118   : > { %968 = vmatprep.mubr.f32.mxu0 %v1762_v0 }
 0x11b   : > { %1475 = vmatmul.mubr.msk.f32.gmra.mrb[10].mxu0 %vm682_vm2, %v814_v17 }
 0x11c   : > { %974 = vmatprep.mubr.f32.mxu0 %v1762_v0 }
 0x11f   : > { %1476 = vmatmul.mubr.msk.f32.gmra.mrb[12].mxu0 %vm682_vm2, %v815_v18 }
 0x120   : > { %980 = vmatprep.mubr.f32.mxu0 %v1762_v0 }
 0x123   : > { %1477 = vmatmul.mubr.msk.f32.gmra.mrb[14].mxu0 %vm682_vm2, %v816_v19 }
 0x124   : > { %986 = vmatprep.mubr.f32.mxu0 %v1762_v0 }
 0x127   : > { %1478 = vmatmul.mubr.msk.f32.gmra.mrb[16].mxu0 %vm682_vm2, %v817_v20 }
 0x128   : > { %992 = vmatprep.mubr.f32.mxu0 %v1762_v0 }
 0x12b   : > { %1479 = vmatmul.mubr.msk.f32.gmra.mrb[18].mxu0 %vm682_vm2, %v818_v21 }
 0x12c   : > { %998 = vmatprep.mubr.f32.mxu0 %v1762_v0 }
 0x12f   : > { %1480 = vmatmul.mubr.msk.f32.gmra.mrb[20].mxu0 %vm682_vm2, %v819_v22 }
 0x1e6   : > { %v958_v24 = vpop.f32.mrb[6].mxu0 }
 0x1e7   : > { %v959_v25 = vadd.f32 %v958_v24, %v831_v23  ;;  %v960_v26 = vpop.f32.mrb[7].mxu0  ;;  %v678_v24 = vld [vmem:[%s2218_s5] sm:$0xff] }
 0x1e8   : > { %v961_v27 = vadd.f32 %v960_v26, %v831_v23  ;;  %1465 = vmatmul.mubr.msk.f32.vlgmr.msra.gmra.mrb[6].mxu1 %vm682_vm2, %v678_v24  ;;  %v680_v26 = vld [vmem:[%s2218_s5 + $0x10] sm:$0xff] }
 0x1e9   : > { %v1005_v28 = vmax.f32 %v959_v25, 0.0  ;;  %765 = vmatprep.mubr.f32.mxu1 %v1762_v0  ;;  %v679_v25 = vld [vmem:[%s2218_s5 + $0x8] sm:$0xff] }
 0x1ea   : > { %v1006_v30 = vmax.f32 %v961_v27, 0.0  ;;  %v964_v31 = vpop.f32.mrb[8].mxu0  ;;  %v681_v27 = vld [vmem:[%s2218_s5 + $0x18] sm:$0xff] }
 0x1eb   : > { %v965_v32 = vadd.f32 %v964_v31, %v836_v29  ;;  %v966_v33 = vpop.f32.mrb[9].mxu0 }
 0x1ec   : > { %v967_v34 = vadd.f32 %v966_v33, %v836_v29  ;;  %v1042_v35 = vadd.f32 %v1006_v30, %v1005_v28  ;;  %1466 = vmatmul.mubr.msk.f32.gmra.mrb[8].mxu1 %vm682_vm2, %v679_v25  ;;  %v1110_v28 = vld [vmem:[%s2219_s6] sm:$0xff] }
 0x1ed   : > { %v1007_v36 = vmax.f32 %v965_v32, 0.0  ;;  %771 = vmatprep.mubr.f32.mxu1 %v1762_v0  ;;  %v1034_v29 = vld [vmem:[#allocation2] sm:$0xff]  ;;  %v1035_v32 = vld [vmem:[#allocation2 + $0x8] sm:$0xff] }
 0x1ee   : > { %v1008_v38 = vmax.f32 %v967_v34, 0.0  ;;  %v970_v39 = vpop.f32.mrb[10].mxu0  ;;  %1043 = vadd.xlane.f32.xlu0 %v1042_v35  ;;  %v1036_v34 = vld [vmem:[#allocation2 + $0x10] sm:$0xff] }
 0x1ef   : > { %v971_v40 = vadd.f32 %v970_v39, %v841_v37  ;;  %v972_v41 = vpop.f32.mrb[11].mxu0 }
 0x1f0   : > { %v973_v42 = vadd.f32 %v972_v41, %v841_v37  ;;  %v1045_v43 = vadd.f32 %v1008_v38, %v1007_v36  ;;  %1467 = vmatmul.mubr.msk.f32.gmra.mrb[10].mxu1 %vm682_vm2, %v680_v26  ;;  %v1037_v37 = vld [vmem:[#allocation2 + $0x18] sm:$0xff] }
 0x1f1   : > { %v1009_v44 = vmax.f32 %v971_v40, 0.0  ;;  %777 = vmatprep.mubr.f32.mxu1 %v1762_v0 }
 0x1f2   : > { %v1010_v46 = vmax.f32 %v973_v42, 0.0  ;;  %v976_v47 = vpop.f32.mrb[12].mxu0  ;;  %1046 = vadd.xlane.f32.xlu1 %v1045_v43  ;;  %v1038_v42 = vld [vmem:[#allocation2 + $0x20] sm:$0xff] }
 0x1f3   : > { %v977_v48 = vadd.f32 %v976_v47, %v846_v45  ;;  %v978_v49 = vpop.f32.mrb[13].mxu0 }
 0x1f4   : > { %v979_v50 = vadd.f32 %v978_v49, %v846_v45  ;;  %v1048_v51 = vadd.f32 %v1010_v46, %v1009_v44  ;;  %1468 = vmatmul.mubr.msk.f32.gmra.mrb[12].mxu1 %vm682_vm2, %v681_v27 }
 0x1f5   : > { %v1011_v52 = vmax.f32 %v977_v48, 0.0  ;;  %1533 = vmatprep.mubr.msk.f32.mxu1 %vm1118_vm4, %v1110_v28  ;;  %v1039_v48 = vld [vmem:[#allocation2 + $0x28] sm:$0xff] }
 0x1f6   : > { %v1012_v54 = vmax.f32 %v979_v50, 0.0  ;;  %v982_v55 = vpop.f32.mrb[14].mxu0  ;;  %1049 = vadd.xlane.f32.xlu0 %v1048_v51 }
 0x1f7   : > { %v983_v56 = vadd.f32 %v982_v55, %v851_v53  ;;  %v984_v57 = vpop.f32.mrb[15].mxu0 }
 0x1f8   : > { %v985_v58 = vadd.f32 %v984_v57, %v851_v53  ;;  %v1051_v59 = vadd.f32 %v1012_v54, %v1011_v52  ;;  %v1040_v53 = vld [vmem:[#allocation2 + $0x30] sm:$0xff] }
 0x1f9   : > { %v1013_v60 = vmax.f32 %v983_v56, 0.0 }
 0x1fa   : > { %v1014_v62 = vmax.f32 %v985_v58, 0.0  ;;  %v988_v63 = vpop.f32.mrb[16].mxu0  ;;  %1052 = vadd.xlane.f32.xlu0 %v1051_v59  ;;  %v1041_v59 = vld [vmem:[#allocation2 + $0x38] sm:$0xff] }
 0x1fb   : > { %v989_v1 = vadd.f32 %v988_v63, %v856_v61  ;;  %v990_v2 = vpop.f32.mrb[17].mxu0 }
 0x1fc   : > { %v991_v3 = vadd.f32 %v990_v2, %v856_v61  ;;  %v1054_v4 = vadd.f32 %v1014_v62, %v1013_v60 }
 0x1fd   : > { %v1015_v5 = vmax.f32 %v989_v1, 0.0 }
 0x1fe   : > { %v1016_v7 = vmax.f32 %v991_v3, 0.0  ;;  %v994_v8 = vpop.f32.mrb[18].mxu0  ;;  %1055 = vadd.xlane.f32.xlu1 %v1054_v4 }
 0x1ff   : > { %v995_v9 = vadd.f32 %v994_v8, %v861_v6  ;;  %v996_v10 = vpop.f32.mrb[19].mxu0 }
 0x200   : > { %v997_v11 = vadd.f32 %v996_v10, %v861_v6  ;;  %v1057_v12 = vadd.f32 %v1016_v7, %v1015_v5  ;;  %v1112_v10 = vld [vmem:[%s2219_s6 + $0x10] sm:$0xff] }
 0x201   : > { %v1017_v13 = vmax.f32 %v995_v9, 0.0  ;;  %v1111_v9 = vld [vmem:[%s2219_s6 + $0x8] sm:$0xff] }
 0x202   : > { %v1018_v15 = vmax.f32 %v997_v11, 0.0  ;;  %v1000_v16 = vpop.f32.mrb[20].mxu0  ;;  %1058 = vadd.xlane.f32.xlu0 %v1057_v12  ;;  %v1113_v11 = vld [vmem:[%s2219_s6 + $0x18] sm:$0xff] }
 0x203   : > { %v1001_v17 = vadd.f32 %v1000_v16, %v866_v14  ;;  %v1002_v18 = vpop.f32.mrb[21].mxu0 }
 0x204   : > { %v1003_v19 = vadd.f32 %v1002_v18, %v866_v14  ;;  %v1060_v20 = vadd.f32 %v1018_v15, %v1017_v13 }
 0x205   : > { %v1019_v21 = vmax.f32 %v1001_v17, 0.0 }
 0x206   : > { %v1020_v22 = vmax.f32 %v1003_v19, 0.0  ;;  %1061 = vadd.xlane.f32.xlu1 %v1060_v20 }
 0x208   : > { %v1063_v23 = vadd.f32 %v1020_v22, %v1019_v21 }
 0x20a   : > { %1064 = vadd.xlane.f32.xlu0 %v1063_v23 }
 0x27b   : > { %v1044_v30 = vpop.xlane.xlu0 %1043 }
 0x27c   : > { %v1066_v31 = vadd.f32 %v1044_v30, %v1034_v29 }
 0x27e   : > { %1075 = vst.msk [vmem:[#allocation2] sm:$0xff] %vm1025_vm3, %v1066_v31 }
 0x27f   : > { %v1047_v0 = vpop.xlane.xlu1 %1046 }
 0x280   : > { %v1067_v33 = vadd.f32 %v1047_v0, %v1035_v32 }
 0x282   : > { %1076 = vst.msk [vmem:[#allocation2 + $0x8] sm:$0xff] %vm1025_vm3, %v1067_v33 }
 0x283   : > { %v1050_v35 = vpop.xlane.xlu0 %1049 }
 0x284   : > { %v1068_v36 = vadd.f32 %v1050_v35, %v1036_v34 }
 0x285   : > { %v1086_v38 = vld [vmem:[#allocation2] sm:$0xff] }
 0x286   : > { %1077 = vst.msk [vmem:[#allocation2 + $0x10] sm:$0xff] %vm1025_vm3, %v1068_v36  ;;  %v1094_v39 = vmul.f32 0.00390625, %v1086_v38 }
 0x287   : > { %v1053_v40 = vpop.xlane.xlu0 %1052 }
 0x288   : > { %v1069_v41 = vadd.f32 %v1053_v40, %v1037_v37  ;;  %1102 = vst.msk [vmem:[%s2061_s21] sm:$0xff] %vm1025_vm3, %v1094_v39 }
 0x289   : > { %v1087_v43 = vld [vmem:[#allocation2 + $0x8] sm:$0xff] }
 0x28a   : > { %1078 = vst.msk [vmem:[#allocation2 + $0x18] sm:$0xff] %vm1025_vm3, %v1069_v41  ;;  %v1095_v44 = vmul.f32 0.00390625, %v1087_v43 }
 0x28b   : > { %v1056_v45 = vpop.xlane.xlu1 %1055 }
 0x28c   : > { %v1070_v46 = vadd.f32 %v1056_v45, %v1038_v42  ;;  %1103 = vst.msk [vmem:[%s2061_s21 + $0x8] sm:$0xff] %vm1025_vm3, %v1095_v44  ;;  %v1563_v47 = vpack.c.bf16 %v1095_v44, %v1094_v39 }
 0x28d   : > { %v1088_v49 = vld [vmem:[#allocation2 + $0x10] sm:$0xff] }
 0x28e   : > { %1079 = vst.msk [vmem:[#allocation2 + $0x20] sm:$0xff] %vm1025_vm3, %v1070_v46  ;;  %1564 = vmatprep.subr.bf16.mxu1 %v1563_v47  ;;  %v1096_v50 = vmul.f32 0.00390625, %v1088_v49 }
 0x28f   : > { %v1059_v51 = vpop.xlane.xlu0 %1058  ;;  %1566 = vmatpush3.bf16.msra.mxu1 %v1563_v47 }
 0x290   : > { %v1071_v52 = vadd.f32 %v1059_v51, %v1039_v48  ;;  %1104 = vst.msk [vmem:[%s2061_s21 + $0x10] sm:$0xff] %vm1025_vm3, %v1096_v50 }
 0x291   : > { %v1089_v54 = vld [vmem:[#allocation2 + $0x18] sm:$0xff] }
 0x292   : > { %1080 = vst.msk [vmem:[#allocation2 + $0x28] sm:$0xff] %vm1025_vm3, %v1071_v52  ;;  %v1097_v55 = vmul.f32 0.00390625, %v1089_v54 }
 0x293   : > { %v1062_v56 = vpop.xlane.xlu1 %1061 }
 0x294   : > { %v1072_v57 = vadd.f32 %v1062_v56, %v1040_v53  ;;  %1105 = vst.msk [vmem:[%s2061_s21 + $0x18] sm:$0xff] %vm1025_vm3, %v1097_v55  ;;  %v1567_v58 = vpack.c.bf16 %v1097_v55, %v1096_v50 }
 0x295   : > { %v1090_v60 = vld [vmem:[#allocation2 + $0x20] sm:$0xff] }
 0x296   : > { %1081 = vst.msk [vmem:[#allocation2 + $0x30] sm:$0xff] %vm1025_vm3, %v1072_v57  ;;  %1568 = vmatprep.subr.bf16.mxu1 %v1567_v58  ;;  %v1098_v61 = vmul.f32 0.00390625, %v1090_v60 }
 0x297   : > { %v1065_v62 = vpop.xlane.xlu0 %1064  ;;  %1570 = vmatpush3.bf16.msra.mxu1 %v1567_v58 }
 0x298   : > { %v1073_v63 = vadd.f32 %v1065_v62, %v1041_v59  ;;  %1106 = vst.msk [vmem:[%s2061_s21 + $0x20] sm:$0xff] %vm1025_vm3, %v1098_v61 }
 0x299   : > { %v1091_v1 = vld [vmem:[#allocation2 + $0x28] sm:$0xff] }
 0x29a   : > { %1082 = vst.msk [vmem:[#allocation2 + $0x38] sm:$0xff] %vm1025_vm3, %v1073_v63  ;;  %v1099_v2 = vmul.f32 0.00390625, %v1091_v1 }
 0x29c   : > { %1107 = vst.msk [vmem:[%s2061_s21 + $0x28] sm:$0xff] %vm1025_vm3, %v1099_v2  ;;  %v1571_v3 = vpack.c.bf16 %v1099_v2, %v1098_v61 }
 0x29d   : > { %v1092_v4 = vld [vmem:[#allocation2 + $0x30] sm:$0xff] }
 0x29e   : > { %1572 = vmatprep.subr.bf16.mxu1 %v1571_v3  ;;  %v1100_v5 = vmul.f32 0.00390625, %v1092_v4 }
 0x29f   : > { %1574 = vmatpush3.bf16.msra.mxu1 %v1571_v3 }
 0x2a0   : > { %1108 = vst.msk [vmem:[%s2061_s21 + $0x30] sm:$0xff] %vm1025_vm3, %v1100_v5 }
 0x2a1   : > { %v1093_v6 = vld [vmem:[#allocation2 + $0x38] sm:$0xff] }
 0x2a2   : > { %v1101_v7 = vmul.f32 0.00390625, %v1093_v6 }
 0x2a4   : > { %1109 = vst.msk [vmem:[%s2061_s21 + $0x38] sm:$0xff] %vm1025_vm3, %v1101_v7  ;;  %v1575_v8 = vpack.c.bf16 %v1101_v7, %v1100_v5  ;;  %s1272_s21 = sshll.u32 %s424_s24, 4  ;;  %s2100_s21 = int_to_ptr.vmem [resolvable:$true] %s1272_s21 }
 0x2a6   : > { %1576 = vmatprep.subr.bf16.mxu1 %v1575_v8 }
 0x2a7   : > { %1578 = vmatpush3.bf16.msra.mxu1 %v1575_v8 }
 0x2aa   : > { %1534 = vmatmul.mubr.msk.f32.vlgmr.msra.gmra.mrb[14].mxu1 %vm1118_vm4, %v1111_v9 }
 0x2ab   : > { %1536 = vmatprep.mubr.msk.f32.mxu1 %vm1118_vm4, %v1112_v10 }
 0x2ae   : > { %1537 = vmatmul.mubr.msk.f32.gmra.mrb[16].mxu1 %vm1118_vm4, %v1113_v11 }
 0x2bb   : > { %v761_v12 = vpop.f32.mrb[6].mxu1 }
 0x2bc   : > { %v763_v13 = vpop.f32.mrb[7].mxu1 }
 0x2bd   : > { %v1500_v14 = vpack.c.bf16 %v763_v13, %v761_v12 }
 0x2bf   : > { %808 = vst [vmem:[%s424_s24] sm:$0xff] %v1500_v14  ;;  %v767_v15 = vpop.f32.mrb[8].mxu1 }
 0x2c0   : > { %v769_v16 = vpop.f32.mrb[9].mxu1 }
 0x2c1   : > { %v1501_v17 = vpack.c.bf16 %v769_v16, %v767_v15 }
 0x2c3   : > { %809 = vst [vmem:[%s424_s24 + $0x8] sm:$0xff] %v1501_v17  ;;  %v773_v18 = vpop.f32.mrb[10].mxu1 }
 0x2c4   : > { %v775_v19 = vpop.f32.mrb[11].mxu1 }
 0x2c5   : > { %v1502_v20 = vpack.c.bf16 %v775_v19, %v773_v18 }
 0x2c7   : > { %810 = vst [vmem:[%s424_s24 + $0x10] sm:$0xff] %v1502_v20  ;;  %v779_v21 = vpop.f32.mrb[12].mxu1 }
 0x2c8   : > { %v781_v22 = vpop.f32.mrb[13].mxu1 }
 0x2c9   : > { %v1503_v23 = vpack.c.bf16 %v781_v22, %v779_v21 }
 0x2cb   : > { %811 = vst [vmem:[%s424_s24 + $0x18] sm:$0xff] %v1503_v23  ;;  %s1654_s24 = sshll.u32 %s1764_s15, 4  ;;  %s1655_s24 = int_to_ptr.vmem [resolvable:$false] %s1654_s24 }
 0x2cc   : > { %s1656_s23 = scalar_lea.vmem %s1655_s24, 1536  ;;  %p1657_p1 = scmp.lt.s32.totalorder %s2108_s25, %s1655_s24 }
 0x2cd   : > { %p1658_p2 = scmp.lt.s32.totalorder %s1656_s23, %s1650_s0 }
 0x2cf   : > { %p1659_p3 = por %p1658_p2, %p1657_p1 }
 0x2d1   : > { %p1660_p5 = pnand %p1659_p3, %p1653_p0 }
 0x2d3   : > { %1663 = shalt.err (!%p1660_p5)
}
 0x2d4   : > { %s1664_s30 = scalar_lea.hbm %s2106_s14, 768  ;;  %s1668_s15 = scalar_lea.hbm %s2221_s8, 1536 }
 0x2d5   : > { %p1665_p6 = scmp.ne.s32.totalorder %s2106_s14, %s1664_s30  ;;  %p1669_p10 = scmp.lt.u32.totalorder %s2106_s14, %s2221_s8 }
 0x2d6   : > { %p1670_p11 = scmp.lt.u32.totalorder %s1668_s15, %s1664_s30  ;;  %p1672_p13 = scmp.lt.u32.totalorder %s1664_s30, %s2106_s14 }
 0x2d7   : > { %p1666_p7 = pnand %p1665_p6, %p1868_p4 }
 0x2d8   : > { %p1671_p12 = por %p1670_p11, %p1669_p10 }
 0x2d9   : > { %p1667_p9 = pneg %p1666_p7 }
 0x2da   : > { %p1673_p0 = por %p1672_p13, %p1671_p12 }
 0x2dc   : > { %p1674_p1 = pnand %p1673_p0, %p1667_p9 }
 0x2de   : > { %1677 = shalt.err (!%p1674_p1)
}
 0x2df   : > { %s1765_s0 = smov 128   ;;  %s1766_s23 = smov 8  }
 0x2e0   : > { %s2242_s16 = scalar_lea.sflag [#allocation4], %s1966_s13  ;;  %s2243_s30 = sshll.u32 %s1752_s20, 9 }
 0x2e1   : > { %1583 = dma.vmem_to_hbm [thread:$0]  (%p1868_p4), %s2108_s25, 768, %s2106_s14, %s2242_s16, %s1765_s0, %s1765_s0, %s1766_s23  }
 0x2e2   : > { %s2142_s15 = scalar_lea.hbm %s2223_s10, %s2243_s30  ;;  %s1231_s24 = scalar_lea.sflag [#allocation6], %s1966_s13 }
 0x2e3   : > { %s1678_s1 = scalar_lea.vmem %s2100_s21, 512  ;;  %s1767_s2 = smov [#allocation5]  }
 0x2e4   : > { %p1679_p2 = scmp.ne.s32.totalorder %s2100_s21, %s1678_s1  ;;  %s1682_s3 = sshll.u32 %s1767_s2, 4  ;;  %s1683_s3 = int_to_ptr.vmem [resolvable:$false] %s1682_s3 }
 0x2e5   : > { %s1684_s4 = scalar_lea.vmem %s1683_s3, 1024  ;;  %p1685_p6 = scmp.lt.s32.totalorder %s2100_s21, %s1683_s3 }
 0x2e6   : > { %p1680_p3 = pnand %p1679_p2, %p1868_p4  ;;  %p1686_p7 = scmp.lt.s32.totalorder %s1684_s4, %s1678_s1 }
 0x2e8   : > { %p1681_p5 = pneg %p1680_p3  ;;  %p1687_p9 = por %p1686_p7, %p1685_p6 }
 0x2ea   : > { %p1688_p10 = pnand %p1687_p9, %p1681_p5 }
 0x2ec   : > { %1691 = shalt.err (!%p1688_p10)
}
 0x2ed   : > { %s1692_s20 = scalar_lea.hbm %s2142_s15, 512  ;;  %s1696_s2 = scalar_lea.hbm %s2223_s10, 1024 }
 0x2ee   : > { %p1693_p11 = scmp.ne.s32.totalorder %s2142_s15, %s1692_s20  ;;  %p1697_p0 = scmp.lt.u32.totalorder %s2142_s15, %s2223_s10 }
 0x2ef   : > { %p1698_p1 = scmp.lt.u32.totalorder %s1696_s2, %s1692_s20  ;;  %p1700_p3 = scmp.lt.u32.totalorder %s1692_s20, %s2142_s15 }
 0x2f0   : > { %p1694_p12 = pnand %p1693_p11, %p1868_p4 }
 0x2f1   : > { %p1699_p2 = por %p1698_p1, %p1697_p0 }
 0x2f2   : > { %p1695_p13 = pneg %p1694_p12 }
 0x2f3   : > { %p1701_p5 = por %p1700_p3, %p1699_p2 }
 0x2f5   : > { %p1702_p6 = pnand %p1701_p5, %p1695_p13 }
 0x2f7   : > { %1705 = shalt.err (!%p1702_p6)
}
 0x2f8   : > { %1584 = dma.vmem_to_hbm [thread:$0]  (%p1868_p4), %s2100_s21, 512, %s2142_s15, %s1231_s24, %s1765_s0, %s1765_s0, %s1766_s23  }
 0x2f9   : > { %s1493_s1 = sshll.u32 %s1887_s12, 5  ;;  %v1115_v24 = vld [vmem:[%s2220_s7 + $0x8] sm:$0xff]  ;;  %v1114_v25 = vld [vmem:[%s2220_s7] sm:$0xff]  ;;  %v1117_v30 = vld [vmem:[%s2220_s7 + $0x18] sm:$0xff] }
 0x2fa   : > { %s453_s25 = scalar_lea.vmem %s2224_s11, %s1493_s1  ;;  %v1116_v31 = vld [vmem:[%s2220_s7 + $0x10] sm:$0xff] }
 0x37d   : > { %v1535_v26 = vpop.f32.mrb[14].mxu1 }
 0x37e   : > { %v1203_v27 = vadd.f32 %v1535_v26, %v1115_v24  ;;  %v1197_v28 = vpop.f32.mrb[15].mxu1 }
 0x37f   : > { %v1198_v29 = vadd.f32 %v1197_v28, %v1114_v25 }
 0x380   : > { %1217 = vst.msk [vmem:[%s453_s25 + $0x8] sm:$0xff] %vm1025_vm3, %v1203_v27 }
 0x381   : > { %1216 = vst.msk [vmem:[%s453_s25] sm:$0xff] %vm1025_vm3, %v1198_v29  ;;  %v1538_v32 = vpop.f32.mrb[16].mxu1 }
 0x382   : > { %v1213_v0 = vadd.f32 %v1538_v32, %v1117_v30  ;;  %v1207_v33 = vpop.f32.mrb[17].mxu1 }
 0x383   : > { %v1208_v34 = vadd.f32 %v1207_v33, %v1116_v31 }
 0x384   : > { %1219 = vst.msk [vmem:[%s453_s25 + $0x18] sm:$0xff] %vm1025_vm3, %v1213_v0 }
 0x385   : > { %1218 = vst.msk [vmem:[%s453_s25 + $0x10] sm:$0xff] %vm1025_vm3, %v1208_v34 }
 0x386 PF: > { %p1594_p4 = scmp.ge.s32.totalorder %s1760_s22, 2  ;;  %s1290_s0 = sand.u32 1, %s1740_s17  }
 0x387   : > { %s1291_s23 = scalar_lea.sflag [#allocation4], %s1290_s0 }
 0x388   : > { %p1588_p7 = pnand %p1594_p4, %p1875_p8 }
 0x38a   : > { %1731 = dma.done.wait (!%p1588_p7), %s1291_s23, 768  }
 0x38b   : > { %1733 = vsyncadd (!%p1588_p7), %s1291_s23, 4294966528  ;;  %s1308_s15 = scalar_lea.sflag [#allocation6], %s1290_s0 }
 0x38c   : > { %1735 = dma.done.wait (!%p1588_p7), %s1308_s15, 512  }
 0x38d   : > { %1737 = vsyncadd (!%p1588_p7), %s1308_s15, 4294966784  ;;  %s28_s22 = sadd.s32 1, %s1760_s22   ;;  %s2244_s24 = sld [smem:[#allocation11_spill]] }
 0x38e   : > { %p25_p9 = scmp.ge.s32.totalorder %s28_s22, 4   ;;  %s2245_s20 = sld [smem:[#allocation9_spill]] }
 0x38f   : > { %s2246_s21 = sld [smem:[#allocation10_spill]]  ;;  %s2247_s17 = smov %s1744_s18 }
 0x390   : > { %s2248_s18 = smov %s1748_s19  ;;  %27 = sbr.rel (!%p25_p9) target bundleno = 12 (0xc), region = 136 }
 0x393   : > { %s2249_s19 = smov %s2244_s24 }
 0x397   :  { %1321 = vsyncpa [#allocation4], 1 }
 0x398   :  { %1323 = vsyncpa [#allocation4 + $0x1], 1 }
 0x399   :  { %1324 = vsyncpa [#allocation6], 1 }
 0x39a   :  { %1326 = vsyncpa [#allocation6 + $0x1], 1 }

</bundles_post_ra>
